<compile_context>
chip_gen: v6e
topology: v6e:2x2x1
jax: 0.10.0
libtpu: 0.0.40
codegen_flags: <defaults>
</compile_context>

<pallas_src>
import jax
import jax.numpy as jnp
from jax.experimental import pallas as pl
from jax.experimental.pallas import tpu as pltpu

_LANE = 128          # lanes per vreg
_SUB = 8             # sublanes per vreg
_TILE_ROWS = 512     # sublane-rows per grid step -> 64K batch elems / step
_MIN_PALLAS_BATCH = 4096


def _round_up(n, m):
    return ((n + m - 1) // m) * m


def mlp_kernel(x_ref, p_ref, o_ref):
    """x_ref: (2, TS, 128) VMEM feature planes over a dense batch tile.
       p_ref: (16,) f32 SMEM = [W1(2x3) row-major, b1(3), W2(3), b2, pad(3)].
       o_ref: (TS, 128) VMEM sigmoid outputs (lane-dense)."""
    x0 = x_ref[0]          # (TS, 128) — feature 0
    x1 = x_ref[1]          # (TS, 128) — feature 1

    # Layer 1 (2 -> 3) + tanh: unrolled VPU FMAs with SMEM scalar broadcasts.
    h0 = jnp.tanh(p_ref[0] * x0 + p_ref[3] * x1 + p_ref[6])
    h1 = jnp.tanh(p_ref[1] * x0 + p_ref[4] * x1 + p_ref[7])
    h2 = jnp.tanh(p_ref[2] * x0 + p_ref[5] * x1 + p_ref[8])

    # Layer 2 (3 -> 1): three more FMAs.
    y = p_ref[9] * h0 + p_ref[10] * h1 + p_ref[11] * h2 + p_ref[12]

    # Exact sigmoid via a single EUP op: sigmoid(y) = 0.5*tanh(0.5*y) + 0.5.
    o_ref[...] = 0.5 * jnp.tanh(0.5 * y) + 0.5


def pack_params(w1, b1, w2, b2):
    """Pack fc1/fc2 weights and biases into one flat (16,) f32 SMEM operand."""
    return jnp.concatenate([
        w1.reshape(-1).astype(jnp.float32),   # p[0:6]  W1 (2,3) row-major
        b1.reshape(-1).astype(jnp.float32),   # p[6:9]  b1
        w2.reshape(-1).astype(jnp.float32),   # p[9:12] W2 (3,1)
        b2.reshape(-1).astype(jnp.float32),   # p[12]   b2
        jnp.zeros((3,), jnp.float32),         # pad to 16
    ])


def net_forward_feature_major(x_planes, packed_params, *, tile_rows=_TILE_ROWS):
    """Production entry point (zero wrapper HBM passes).

    x_planes: (2, rows, 128) f32 with rows % 8 == 0 — batch laid dense on
    (sublane, lane), one plane per input feature.  Returns (rows, 128) f32.
    """
    _, rows, lane = x_planes.shape
    assert lane == _LANE and rows % _SUB == 0
    ts = min(tile_rows, rows)              # rows is a multiple of 8, so ts is too
    grid = (pl.cdiv(rows, ts),)

    return pl.pallas_call(
        mlp_kernel,
        out_shape=jax.ShapeDtypeStruct((rows, _LANE), jnp.float32),
        grid=grid,
        in_specs=[
            pl.BlockSpec((2, ts, _LANE), lambda i: (0, i, 0)),       # x tile -> VMEM
            pl.BlockSpec(memory_space=pltpu.MemorySpace.SMEM),       # packed params
        ],
        out_specs=pl.BlockSpec((ts, _LANE), lambda i: (i, 0)),
        compiler_params=pltpu.CompilerParams(
            dimension_semantics=("parallel",)),
    )(x_planes, packed_params)


def net_forward_pallas(x, packed_params, *, tile_rows=_TILE_ROWS):
    """x: (B, 2) f32 -> (B, 1) f32 through the Pallas kernel.

    Does exactly one fused pad+transpose producer pass to feature-major
    planes; a feature-major producer should call net_forward_feature_major
    directly and skip it."""
    B = x.shape[0]
    Bp = _round_up(B, _SUB * _LANE)
    rows = Bp // _LANE
    xp = jnp.pad(x.astype(jnp.float32), ((0, Bp - B), (0, 0)))
    x_planes = xp.T.reshape(2, rows, _LANE)        # one fused HBM pass
    out = net_forward_feature_major(x_planes, packed_params, tile_rows=tile_rows)
    out = out.reshape(Bp, 1)                       # contiguous reshape: free
    return out if Bp == B else out[:B]


def net_forward(x, w1, b1, w2, b2, *, min_pallas_batch=_MIN_PALLAS_BATCH):
    """y = sigmoid(tanh(x @ W1 + b1) @ W2 + b2), auto-dispatching jnp/pallas."""
    if x.shape[0] < min_pallas_batch:
        # Launch/DMA overhead dominates tiny batches; let XLA fuse the chain.
        return jax.nn.sigmoid(jnp.tanh(x @ w1 + b1) @ w2 + b2)
    return net_forward_pallas(x, pack_params(w1, b1, w2, b2))


def init_params(key):
    """Deterministic PyTorch-style init: U(-1/sqrt(fan_in), 1/sqrt(fan_in))."""
    k1, k2, k3, k4 = jax.random.split(key, 4)
    bound1 = 1.0 / jnp.sqrt(2.0)   # fc1: fan_in = 2
    bound2 = 1.0 / jnp.sqrt(3.0)   # fc2: fan_in = 3
    w1 = jax.random.uniform(k1, (2, 3), jnp.float32, -bound1, bound1)
    b1 = jax.random.uniform(k2, (3,), jnp.float32, -bound1, bound1)
    w2 = jax.random.uniform(k3, (3, 1), jnp.float32, -bound2, bound2)
    b2 = jax.random.uniform(k4, (1,), jnp.float32, -bound2, bound2)
    return w1, b1, w2, b2


if __name__ == "__main__":
    key = jax.random.PRNGKey(0)
    kx, kx2, kp = jax.random.split(key, 3)
    w1, b1, w2, b2 = init_params(kp)
    p16 = pack_params(w1, b1, w2, b2)

    def ref(xi):
        return jax.nn.sigmoid(jnp.tanh(xi @ w1 + b1) @ w2 + b2)

    # 1) Tiny batch through the Pallas kernel (single 8x128 tile).
    B = 8
    x = jax.random.normal(kx, (B, 2), jnp.float32)
    out = jax.block_until_ready(net_forward_pallas(x, p16))
    assert out.shape == (B, 1)
    assert jnp.allclose(out, ref(x), atol=1e-5), "pallas mismatch (B=8)"

    # 2) Multi-tile grid (3 steps) with a ragged batch that needs pad+slice.
    B2 = 2100
    x2 = jax.random.normal(kx2, (B2, 2), jnp.float32)
    out2 = jax.block_until_ready(net_forward_pallas(x2, p16, tile_rows=8))
    assert out2.shape == (B2, 1)
    assert jnp.allclose(out2, ref(x2), atol=1e-5), "pallas mismatch (B=2100)"

    # 3) Auto-dispatch small-batch fallback (fused XLA path).
    out3 = jax.block_until_ready(net_forward(x, w1, b1, w2, b2))
    assert jnp.allclose(out3, ref(x), atol=1e-6), "fallback mismatch"

    print("KERNEL_OK")
</pallas_src>

<mosaic_0001>
module attributes {stable_mosaic.version = 11 : i64} {
  func.func @mlp_kernel(%arg0: i32, %arg1: memref<2x8x128xf32, #tpu.memory_space<vmem>>, %arg2: memref<16xf32, #tpu.memory_space<smem>>, %arg3: memref<8x128xf32, #tpu.memory_space<vmem>>) attributes {dimension_semantics = [#tpu.dimension_semantics<parallel>], iteration_bounds = array<i64: 1>, scalar_prefetch = 0 : i64, scratch_operands = 0 : i64, tpu.core_type = #tpu.core_type<tc>, window_params = [{transform_indices = @transform_0, window_bounds = array<i64: 2, 8, 128>}, {transform_indices = @transform_1, window_bounds = array<i64: 16>}, {transform_indices = @transform_2, window_bounds = array<i64: 8, 128>}]} {
    %c0 = arith.constant 0 : index
    %c0_0 = arith.constant 0 : index
    %c0_1 = arith.constant 0 : index
    %0 = vector.load %arg1[%c0, %c0_0, %c0_1] : memref<2x8x128xf32, #tpu.memory_space<vmem>>, vector<1x8x128xf32>
    %1 = vector.shape_cast %0 : vector<1x8x128xf32> to vector<8x128xf32>
    %c1 = arith.constant 1 : index
    %c0_2 = arith.constant 0 : index
    %c0_3 = arith.constant 0 : index
    %2 = vector.load %arg1[%c1, %c0_2, %c0_3] : memref<2x8x128xf32, #tpu.memory_space<vmem>>, vector<1x8x128xf32>
    %3 = vector.shape_cast %2 : vector<1x8x128xf32> to vector<8x128xf32>
    %c0_4 = arith.constant 0 : index
    %4 = memref.load %arg2[%c0_4] : memref<16xf32, #tpu.memory_space<smem>>
    %5 = vector.broadcast %4 : f32 to vector<8x128xf32>
    %6 = arith.mulf %5, %1 : vector<8x128xf32>
    %c3 = arith.constant 3 : index
    %7 = memref.load %arg2[%c3] : memref<16xf32, #tpu.memory_space<smem>>
    %8 = vector.broadcast %7 : f32 to vector<8x128xf32>
    %9 = arith.mulf %8, %3 : vector<8x128xf32>
    %10 = arith.addf %6, %9 : vector<8x128xf32>
    %c6 = arith.constant 6 : index
    %11 = memref.load %arg2[%c6] : memref<16xf32, #tpu.memory_space<smem>>
    %12 = vector.broadcast %11 : f32 to vector<8x128xf32>
    %13 = arith.addf %10, %12 : vector<8x128xf32>
    %14 = math.tanh %13 : vector<8x128xf32>
    %c1_5 = arith.constant 1 : index
    %15 = memref.load %arg2[%c1_5] : memref<16xf32, #tpu.memory_space<smem>>
    %16 = vector.broadcast %15 : f32 to vector<8x128xf32>
    %17 = arith.mulf %16, %1 : vector<8x128xf32>
    %c4 = arith.constant 4 : index
    %18 = memref.load %arg2[%c4] : memref<16xf32, #tpu.memory_space<smem>>
    %19 = vector.broadcast %18 : f32 to vector<8x128xf32>
    %20 = arith.mulf %19, %3 : vector<8x128xf32>
    %21 = arith.addf %17, %20 : vector<8x128xf32>
    %c7 = arith.constant 7 : index
    %22 = memref.load %arg2[%c7] : memref<16xf32, #tpu.memory_space<smem>>
    %23 = vector.broadcast %22 : f32 to vector<8x128xf32>
    %24 = arith.addf %21, %23 : vector<8x128xf32>
    %25 = math.tanh %24 : vector<8x128xf32>
    %c2 = arith.constant 2 : index
    %26 = memref.load %arg2[%c2] : memref<16xf32, #tpu.memory_space<smem>>
    %27 = vector.broadcast %26 : f32 to vector<8x128xf32>
    %28 = arith.mulf %27, %1 : vector<8x128xf32>
    %c5 = arith.constant 5 : index
    %29 = memref.load %arg2[%c5] : memref<16xf32, #tpu.memory_space<smem>>
    %30 = vector.broadcast %29 : f32 to vector<8x128xf32>
    %31 = arith.mulf %30, %3 : vector<8x128xf32>
    %32 = arith.addf %28, %31 : vector<8x128xf32>
    %c8 = arith.constant 8 : index
    %33 = memref.load %arg2[%c8] : memref<16xf32, #tpu.memory_space<smem>>
    %34 = vector.broadcast %33 : f32 to vector<8x128xf32>
    %35 = arith.addf %32, %34 : vector<8x128xf32>
    %36 = math.tanh %35 : vector<8x128xf32>
    %c9 = arith.constant 9 : index
    %37 = memref.load %arg2[%c9] : memref<16xf32, #tpu.memory_space<smem>>
    %38 = vector.broadcast %37 : f32 to vector<8x128xf32>
    %39 = arith.mulf %38, %14 : vector<8x128xf32>
    %c10 = arith.constant 10 : index
    %40 = memref.load %arg2[%c10] : memref<16xf32, #tpu.memory_space<smem>>
    %41 = vector.broadcast %40 : f32 to vector<8x128xf32>
    %42 = arith.mulf %41, %25 : vector<8x128xf32>
    %43 = arith.addf %39, %42 : vector<8x128xf32>
    %c11 = arith.constant 11 : index
    %44 = memref.load %arg2[%c11] : memref<16xf32, #tpu.memory_space<smem>>
    %45 = vector.broadcast %44 : f32 to vector<8x128xf32>
    %46 = arith.mulf %45, %36 : vector<8x128xf32>
    %47 = arith.addf %43, %46 : vector<8x128xf32>
    %c12 = arith.constant 12 : index
    %48 = memref.load %arg2[%c12] : memref<16xf32, #tpu.memory_space<smem>>
    %49 = vector.broadcast %48 : f32 to vector<8x128xf32>
    %50 = arith.addf %47, %49 : vector<8x128xf32>
    %cst = arith.constant 5.000000e-01 : f32
    %51 = vector.broadcast %cst : f32 to vector<8x128xf32>
    %52 = arith.mulf %51, %50 : vector<8x128xf32>
    %53 = math.tanh %52 : vector<8x128xf32>
    %cst_6 = arith.constant 5.000000e-01 : f32
    %54 = vector.broadcast %cst_6 : f32 to vector<8x128xf32>
    %55 = arith.mulf %54, %53 : vector<8x128xf32>
    %cst_7 = arith.constant 5.000000e-01 : f32
    %56 = vector.broadcast %cst_7 : f32 to vector<8x128xf32>
    %57 = arith.addf %55, %56 : vector<8x128xf32>
    %c0_8 = arith.constant 0 : index
    %c0_9 = arith.constant 0 : index
    %58 = vector.load %arg3[%c0_8, %c0_9] : memref<8x128xf32, #tpu.memory_space<vmem>>, vector<8x128xf32>
    tpu.vector_store %arg3[%c0_8, %c0_9], %57 {strides = array<i32>} : memref<8x128xf32, #tpu.memory_space<vmem>>, vector<8x128xf32>,
    return
  }
  func.func @transform_0(%arg0: i32) -> (i32, i32, i32) {
    %c0_i32 = arith.constant 0 : i32
    %c0_i32_0 = arith.constant 0 : i32
    %c0_i32_1 = arith.constant 0 : i32
    return %c0_i32, %arg0, %c0_i32_0 : i32, i32, i32
  }
  func.func @transform_1(%arg0: i32) -> i32 {
    %c0_i32 = arith.constant 0 : i32
    %c0_i32_0 = arith.constant 0 : i32
    return %c0_i32 : i32
  }
  func.func @transform_2(%arg0: i32) -> (i32, i32) {
    %c0_i32 = arith.constant 0 : i32
    %c0_i32_0 = arith.constant 0 : i32
    return %arg0, %c0_i32 : i32, i32
  }
}

</mosaic_0001>

<bundles_post_ra>
// kernel: tpu_custom_call.1
= control target key start
LH: loop header
LB: loop body
LE: loop exit
PB: predicated region body
PF: predicated region fallthrough
CT: control target
= control target key end

     0   :  { %7 = vsyncpa [#allocation3], 0  ;;  %s222_s0 = inlined_call_operand.hbm [shape: f32[2,8,128], index: 0, kind: input, shape index: {}]   ;;  %s223_s1 = inlined_call_operand.vmem [shape: f32[16], index: 1, kind: input, shape index: {}]   ;;  %s224_s2 = inlined_call_operand.hbm [shape: f32[8,128], index: 2, kind: output, shape index: {}]  }
   0x1   :  { %8 = vsyncpa [#allocation5], 0 }
   0x2   :  { %9 = vsyncpa [#allocation4], 0  ;;  %s193_s9 = smov [#allocation2]   ;;  %s28_s13 = sshll.u32 %s223_s1, 4  ;;  %s29_s13 = int_to_ptr.vmem [resolvable:$true] %s28_s13 }
   0x3   :  { %s15_s10 = sshll.u32 %s193_s9, 4  ;;  %s16_s10 = int_to_ptr.vmem [resolvable:$true] %s15_s10 }
   0x4   :  { %s143_s14 = scalar_lea.vmem %s16_s10, 256  ;;  %p148_p1 = scmp.lt.s32.totalorder %s16_s10, %s16_s10 }
   0x5   :  { %p144_p0 = scmp.ne.s32.totalorder %s16_s10, %s143_s14  ;;  %p149_p2 = scmp.lt.s32.totalorder %s143_s14, %s143_s14 }
   0x7   :  { %p150_p3 = por %p149_p2, %p148_p1 }
   0x9   :  { %p151_p4 = pnand %p150_p3, %p144_p0 }
   0xb   :  { %154 = shalt.err (!%p151_p4)
}
   0xc   :  { %s194_s15 = smov 128   ;;  %s195_s16 = smov 8  }
   0xd   :  { %21 = dma.hbm_to_vmem [thread:$0]  %s222_s0, 256, %s16_s10, [#allocation3], %s194_s15, %s194_s15, %s195_s16  }
   0xe   :  { %s155_s19 = scalar_lea.vmem %s29_s13, 16  ;;  %p160_p6 = scmp.lt.s32.totalorder %s29_s13, %s29_s13 }
   0xf   :  { %p156_p5 = scmp.ne.s32.totalorder %s29_s13, %s155_s19  ;;  %p161_p7 = scmp.lt.s32.totalorder %s155_s19, %s155_s19 }
  0x11   :  { %p162_p8 = por %p161_p7, %p160_p6 }
  0x13   :  { %p163_p9 = pnand %p162_p8, %p156_p5 }
  0x15   :  { %166 = shalt.err (!%p163_p9)
}
  0x16   :  { %s196_s1 = smov [#allocation6]  }
  0x17   :  { %31 = dma.vmem_to_smem %s29_s13, 16, %s196_s1, [#allocation5]  }
  0x18   :  { %187 = dma.done.wait [#allocation3], 256  }
  0x19   :  { %188 = vsyncadd [#allocation3], 4294967040 }
  0x1a   :  { %189 = dma.done.wait [#allocation5], 16  }
  0x1b   :  { %190 = vsyncadd [#allocation5], 4294967280 }
  0x1c   :  { %38 = sfence }
  0x1d   :  { %s42_s20 = sld [smem:[#allocation6]]  ;;  %v39_v0 = vld [vmem:[#allocation2] sm:$0xff]  ;;  %v41_v1 = vld [vmem:[#allocation2 + $0x8] sm:$0xff]  ;;  %s197_s4 = smov [#allocation7]  }
  0x1e   :  { %s110_s21 = sld [smem:[#allocation6 + $0x3]]  ;;  %s100_s5 = sshll.u32 %s197_s4, 4  ;;  %s101_s5 = int_to_ptr.vmem [resolvable:$true] %s100_s5 }
  0x1f   :  { %s111_s22 = sld [smem:[#allocation6 + $0x6]]  ;;  %s167_s6 = scalar_lea.vmem %s101_s5, 128 }
  0x20   :  { %s112_s23 = sld [smem:[#allocation6 + $0x1]]  ;;  %p168_p10 = scmp.ne.s32.totalorder %s101_s5, %s167_s6 }
  0x21   :  { %s113_s0 = sld [smem:[#allocation6 + $0x4]]  ;;  %p172_p11 = scmp.lt.s32.totalorder %s101_s5, %s101_s5 }
  0x22   :  { %s114_s24 = sld [smem:[#allocation6 + $0x7]]  ;;  %p173_p12 = scmp.lt.s32.totalorder %s167_s6, %s167_s6 }
  0x23   :  { %v43_v2 = vstv %s42_s20  ;;  %s115_s25 = sld [smem:[#allocation6 + $0x2]] }
  0x24   :  { %v44_v3 = vmul.f32 %v43_v2, %v39_v0  ;;  %v46_v4 = vstv %s110_s21  ;;  %s116_s26 = sld [smem:[#allocation6 + $0x5]]  ;;  %p174_p13 = por %p173_p12, %p172_p11 }
  0x25   :  { %v47_v5 = vmul.f32 %v46_v4, %v41_v1  ;;  %s117_s27 = sld [smem:[#allocation6 + $0x8]]  ;;  %v50_v6 = vstv %s111_s22 }
  0x26   :  { %v54_v7 = vstv %s112_s23  ;;  %s118_s28 = sld [smem:[#allocation6 + $0x9]]  ;;  %p175_p0 = pnand %p174_p13, %p168_p10 }
  0x27   :  { %v48_v8 = vadd.f32 %v47_v5, %v44_v3  ;;  %v55_v9 = vmul.f32 %v54_v7, %v39_v0  ;;  %v57_v10 = vstv %s113_s0  ;;  %s119_s29 = sld [smem:[#allocation6 + $0xa]] }
  0x28   :  { %v58_v11 = vmul.f32 %v57_v10, %v41_v1  ;;  %v61_v13 = vstv %s114_s24  ;;  %s120_s30 = sld [smem:[#allocation6 + $0xb]] }
  0x29   :  { %v51_v12 = vadd.f32 %v50_v6, %v48_v8  ;;  %v65_v14 = vstv %s115_s25  ;;  %s121_s3 = sld [smem:[#allocation6 + $0xc]] }
  0x2a   :  { %v59_v15 = vadd.f32 %v58_v11, %v55_v9  ;;  %v66_v16 = vmul.f32 %v65_v14, %v39_v0  ;;  %v68_v17 = vstv %s116_s26 }
  0x2b   :  { %127 = vtanh.f32 %v51_v12  ;;  %v69_v18 = vmul.f32 %v68_v17, %v41_v1  ;;  %v72_v20 = vstv %s117_s27 }
  0x2c   :  { %v62_v19 = vadd.f32 %v61_v13, %v59_v15  ;;  %v76_v23 = vstv %s118_s28 }
  0x2d   :  { %v70_v21 = vadd.f32 %v69_v18, %v66_v16  ;;  %v79_v25 = vstv %s119_s29 }
  0x2e   :  { %129 = vtanh.f32 %v62_v19  ;;  %v83_v29 = vstv %s120_s30 }
  0x2f   :  { %v73_v22 = vadd.f32 %v72_v20, %v70_v21  ;;  %v87_v33 = vstv %s121_s3 }
  0x31   :  { %131 = vtanh.f32 %v73_v22 }
  0x38   :  { %v128_v24 = vpop.eup %127 }
  0x39   :  { %v77_v26 = vmul.f32 %v128_v24, %v76_v23 }
  0x3b   :  { %v130_v27 = vpop.eup %129 }
  0x3c   :  { %v80_v28 = vmul.f32 %v130_v27, %v79_v25 }
  0x3e   :  { %v132_v30 = vpop.eup %131  ;;  %v81_v31 = vadd.f32 %v80_v28, %v77_v26 }
  0x3f   :  { %v84_v32 = vmul.f32 %v132_v30, %v83_v29 }
  0x41   :  { %v85_v34 = vadd.f32 %v84_v32, %v81_v31 }
  0x43   :  { %v88_v35 = vadd.f32 %v87_v33, %v85_v34 }
  0x45   :  { %v89_v36 = vmul.f32 0.5, %v88_v35 }
  0x47   :  { %133 = vtanh.f32 %v89_v36 }
  0x54   :  { %v134_v37 = vpop.eup %133 }
  0x55   :  { %v91_v38 = vmul.f32 0.5, %v134_v37 }
  0x57   :  { %v92_v39 = vadd.f32 0.5, %v91_v38 }
  0x59   :  { %93 = vst [vmem:[#allocation7] sm:$0xff] %v92_v39 }
  0x5a   :  { %178 = shalt.err (!%p175_p0)
}
  0x5b   :  { %103 = dma.vmem_to_hbm [thread:$0]  %s101_s5, 128, %s224_s2, [#allocation4]  }
  0x5c   :  { %191 = dma.done.wait [#allocation4], 128  }
  0x5d   :  { %192 = vsyncadd [#allocation4], 4294967168 }
  0x5e   :  { %107 = vsyncpa [#allocation3], 1 }
  0x5f   :  { %108 = vsyncpa [#allocation4], 1 }
  0x60   :  { %109 = vsyncpa [#allocation5], 1 }

</bundles_post_ra>
